<compile_context>
chip_gen: v7x
topology: tpu7x:2x2x1
jax: 0.10.0
libtpu: 0.0.40
codegen_flags: <defaults>
</compile_context>

<pallas_src>
import functools

import jax
import jax.numpy as jnp
from jax.experimental import pallas as pl
from jax.experimental.pallas import tpu as pltpu

LANE = 128


def _round_up(x, m):
    return (x + m - 1) // m * m


@functools.lru_cache(maxsize=None)
def _chip_config():
    """Per-generation tiling / VMEM parameters."""
    kind = ""
    try:
        kind = jax.devices()[0].device_kind.lower()
    except Exception:
        pass
    if "v7" in kind:
        # 64 MiB VMEM/TC, 2x256x256 MXU, 2 TensorCores per chip.
        return dict(max_tm=1024, max_tn=512, max_tk=512,
                    lane_align=256, vmem_limit=56 * 1024 * 1024)
    if "v5" in kind or "v6" in kind:
        # v5e / v6e: 128 MiB VMEM, single TensorCore.
        return dict(max_tm=2048, max_tn=512, max_tk=512,
                    lane_align=128, vmem_limit=96 * 1024 * 1024)
    # Unknown / older chips: conservative tiles, compiler-default VMEM cap.
    return dict(max_tm=512, max_tn=512, max_tk=512,
                lane_align=128, vmem_limit=None)


def _compiler_params(dimension_semantics):
    cfg = _chip_config()
    kwargs = dict(dimension_semantics=dimension_semantics)
    if cfg["vmem_limit"]:
        kwargs["vmem_limit_bytes"] = cfg["vmem_limit"]
    return pltpu.CompilerParams(**kwargs)


def _pick_dim(size, max_tile, align, min_pref=256):
    """Return (tile, padded_size).  tile is `align`-aligned and padded_size is a
    multiple of tile.  Prefers tiles >= min_pref (full MXU passes) with minimal
    padding instead of silently falling back to 128-wide tiles."""
    size_a = _round_up(size, align)
    if size_a <= max_tile:
        return size_a, size_a
    cands = list(range(align, max_tile + 1, align))
    pref = [t for t in cands if t >= min_pref] or cands
    tile = min(pref, key=lambda t: (_round_up(size_a, t), -t))
    return tile, _round_up(size_a, tile)


def _pad2d(a, rows, cols, dtype=None):
    if dtype is not None:
        a = a.astype(dtype)
    r, c = a.shape
    return jnp.pad(a, ((0, rows - r), (0, cols - c)))


# --------------------- GEMM kernel (strided conv1 path) --------------------- #

def _gemm_bias_act_kernel(p_ref, w_ref, b_ref, out_ref, acc_ref, *, relu):
    """Tiled (TM,TK)@(TK,TN) K-reduction; BN scale pre-folded into w,
    bias seeds the f32 accumulator, epilogue is ReLU + cast only."""
    k = pl.program_id(2)

    @pl.when(k == 0)
    def _():
        acc_ref[...] = jnp.broadcast_to(b_ref[...], acc_ref.shape)

    acc_ref[...] += jnp.dot(p_ref[...], w_ref[...],
                            preferred_element_type=jnp.float32)

    @pl.when(k == pl.num_programs(2) - 1)
    def _():
        y = acc_ref[...]
        if relu:
            y = jnp.maximum(y, 0.0)
        out_ref[...] = y.astype(out_ref.dtype)


def _gemm_bias_act(patches, w, bias, *, relu, out_dtype):
    """out = act(patches @ w + bias); w already carries the folded BN scale."""
    cfg = _chip_config()
    m, kdim = patches.shape
    cout = w.shape[1]

    tn, cout_p = _pick_dim(cout, cfg["max_tn"], cfg["lane_align"])
    tk, k_p = _pick_dim(kdim, cfg["max_tk"], cfg["lane_align"])
    max_tm = cfg["max_tm"]
    if m > 2 * LANE:  # leave >=2 row tiles so both v7x TensorCores get work
        max_tm = min(max_tm, _round_up((m + 1) // 2, LANE))
    tm, m_p = _pick_dim(m, max_tm, LANE, min_pref=LANE)

    p = _pad2d(patches, m_p, k_p, jnp.bfloat16)
    wp = _pad2d(w, k_p, cout_p, jnp.bfloat16)
    bp = _pad2d(bias, 1, cout_p, jnp.float32)

    grid = (m_p // tm, cout_p // tn, k_p // tk)
    cost = pl.CostEstimate(
        flops=2 * m_p * k_p * cout_p,
        transcendentals=0,
        bytes_accessed=int(p.size * 2 + wp.size * 2 * grid[0]
                           + m_p * cout_p * jnp.dtype(out_dtype).itemsize))

    out = pl.pallas_call(
        functools.partial(_gemm_bias_act_kernel, relu=relu),
        out_shape=jax.ShapeDtypeStruct((m_p, cout_p), out_dtype),
        grid_spec=pltpu.PrefetchScalarGridSpec(
            num_scalar_prefetch=0,
            grid=grid,
            in_specs=[
                pl.BlockSpec((tm, tk), lambda i, j, k: (i, k)),
                pl.BlockSpec((tk, tn), lambda i, j, k: (k, j)),
                pl.BlockSpec((1, tn), lambda i, j, k: (0, j)),
            ],
            out_specs=pl.BlockSpec((tm, tn), lambda i, j, k: (i, j)),
            scratch_shapes=[pltpu.VMEM((tm, tn), jnp.float32)],
        ),
        compiler_params=_compiler_params(("parallel", "parallel", "arbitrary")),
        cost_estimate=cost,
    )(p, wp, bp)
    return out[:m, :cout]


# ----------- per-image 3x3 stride-1 conv kernels (no HBM im2col) ----------- #

def _conv9_acc(x_ref, w_ref, wp, n_rows):
    """Sum of 9 shifted MXU dots on a flattened (row pitch = wp) padded image."""
    acc = None
    for ky in range(3):
        for kx in range(3):
            off = ky * wp + kx
            lhs = x_ref[0, off:off + n_rows, :]           # (n_rows, Cin) bf16
            part = jnp.dot(lhs, w_ref[ky * 3 + kx],
                           preferred_element_type=jnp.float32)
            acc = part if acc is None else acc + part
    return acc


def _conv3x3_kernel(x_ref, w_ref, b_ref, o_ref, *, wp, n_rows, relu):
    y = _conv9_acc(x_ref, w_ref, wp, n_rows) + b_ref[...]
    if relu:
        y = jnp.maximum(y, 0.0)
    o_ref[0] = y.astype(o_ref.dtype)


def _conv3x3_addres_kernel(x_ref, w_ref, b_ref, r_ref, o_ref, *, wp, n_rows):
    # identity skip, added in f32 on the VPU (no eye matmul, no bf16 round-trip)
    y = _conv9_acc(x_ref, w_ref, wp, n_rows) + b_ref[...] + r_ref[0]
    o_ref[0] = jnp.maximum(y, 0.0).astype(o_ref.dtype)


def _conv3x3_projres_kernel(x_ref, w_ref, b_ref, rp_ref, wr_ref, o_ref, *,
                            wp, n_rows):
    # fused 1x1 projection skip: one extra dot (BN3 scale folded into wr)
    y = _conv9_acc(x_ref, w_ref, wp, n_rows) + b_ref[...]
    y = y + jnp.dot(rp_ref[0], wr_ref[...], preferred_element_type=jnp.float32)
    o_ref[0] = jnp.maximum(y, 0.0).astype(o_ref.dtype)


def _conv3x3_s1(x_nhwc, w9, bias, *, relu, out_dtype, residual=None, proj=None):
    """3x3 stride-1 pad-1 conv (+ folded BN) with an optional fused residual.

    x_nhwc   : (N, H, W, Cin)              conv input (cast to bf16 inside)
    w9       : (9, Cin, Cout) f32          BN-scale-folded weights, ky-major
    bias     : (1, Cout) f32               folded bias (incl. residual-BN bias)
    residual : (N, H, W, Cout) f32         identity skip, added in f32
    proj     : (res_lhs (N,H,W,Cr), wr (Cr,Cout))  fused 1x1 projection skip
    """
    cfg = _chip_config()
    n, h, w, cin = x_nhwc.shape
    cout = w9.shape[-1]
    tn, cout_p = _pick_dim(cout, cfg["max_tn"], cfg["lane_align"])

    hp, wpad = h + 3, w + 2        # H padded by (1,2) so all shifts stay in-bounds
    mf = h * wpad                  # rows per image (incl. W-pad garbage columns)

    x_flat = jnp.pad(x_nhwc.astype(jnp.bfloat16),
                     ((0, 0), (1, 2), (1, 1), (0, 0))).reshape(n, hp * wpad, cin)
    w_p = jnp.pad(w9.astype(jnp.bfloat16), ((0, 0), (0, 0), (0, cout_p - cout)))
    b_p = jnp.pad(bias.astype(jnp.float32), ((0, 0), (0, cout_p - cout)))

    in_specs = [
        pl.BlockSpec((1, hp * wpad, cin), lambda i, j: (i, 0, 0)),
        pl.BlockSpec((9, cin, tn), lambda i, j: (0, 0, j)),
        pl.BlockSpec((1, tn), lambda i, j: (0, j)),
    ]
    args = [x_flat, w_p, b_p]
    extra_k = 0

    if residual is not None:
        r = jnp.pad(residual.astype(jnp.float32),
                    ((0, 0), (0, 0), (0, wpad - w), (0, cout_p - cout)))
        args.append(r.reshape(n, mf, cout_p))
        in_specs.append(pl.BlockSpec((1, mf, tn), lambda i, j: (i, 0, j)))
        kernel = functools.partial(_conv3x3_addres_kernel, wp=wpad, n_rows=mf)
    elif proj is not None:
        res_lhs, wr = proj
        cin_r = res_lhs.shape[-1]
        extra_k = cin_r
        rl = jnp.pad(res_lhs.astype(jnp.bfloat16),
                     ((0, 0), (0, 0), (0, wpad - w), (0, 0))).reshape(n, mf, cin_r)
        wr_p = jnp.pad(wr.astype(jnp.bfloat16), ((0, 0), (0, cout_p - cout)))
        args += [rl, wr_p]
        in_specs += [pl.BlockSpec((1, mf, cin_r), lambda i, j: (i, 0, 0)),
                     pl.BlockSpec((cin_r, tn), lambda i, j: (0, j))]
        kernel = functools.partial(_conv3x3_projres_kernel, wp=wpad, n_rows=mf)
    else:
        kernel = functools.partial(_conv3x3_kernel, wp=wpad, n_rows=mf, relu=relu)

    grid = (n, cout_p // tn)
    cost = pl.CostEstimate(
        flops=2 * n * mf * cout_p * (9 * cin + extra_k),
        transcendentals=0,
        bytes_accessed=int(sum(int(a.size) * a.dtype.itemsize for a in args)
                           + n * mf * cout_p * jnp.dtype(out_dtype).itemsize))

    out = pl.pallas_call(
        kernel,
        out_shape=jax.ShapeDtypeStruct((n, mf, cout_p), out_dtype),
        grid_spec=pltpu.PrefetchScalarGridSpec(
            num_scalar_prefetch=0,
            grid=grid,
            in_specs=in_specs,
            out_specs=pl.BlockSpec((1, mf, tn), lambda i, j: (i, 0, j)),
        ),
        compiler_params=_compiler_params(("parallel", "parallel")),
        cost_estimate=cost,
    )(*args)

    return out.reshape(n, h, wpad, cout_p)[:, :, :w, :cout]


# ------------------------------- glue (JAX) -------------------------------- #

def _im2col(x_nhwc, k, stride, pad):
    """x: (N,H,W,C) -> patches (N*Ho*Wo, K*K*C), plus (N, Ho, Wo)."""
    xp = jnp.pad(x_nhwc, ((0, 0), (pad, pad), (pad, pad), (0, 0)))
    n, hp, wp, c = xp.shape
    ho = (hp - k) // stride + 1
    wo = (wp - k) // stride + 1
    cols = []
    for ky in range(k):
        for kx in range(k):
            cols.append(
                xp[:, ky:ky + (ho - 1) * stride + 1:stride,
                      kx:kx + (wo - 1) * stride + 1:stride, :])
    p = jnp.stack(cols, axis=3)  # (N, Ho, Wo, K*K, C)
    return p.reshape(n * ho * wo, k * k * c), (n, ho, wo)


def _w_as_matrix(w_oikk):
    """PyTorch conv weight (O, I, Kh, Kw) -> (Kh*Kw*I, O) (im2col order)."""
    o, i, kh, kw = w_oikk.shape
    return jnp.transpose(w_oikk, (2, 3, 1, 0)).reshape(kh * kw * i, o)


def _w_as_taps(w_oikk):
    """PyTorch 3x3 conv weight (O, I, 3, 3) -> (9, I, O), ky-major then kx."""
    o, i, kh, kw = w_oikk.shape
    return jnp.transpose(w_oikk, (2, 3, 1, 0)).reshape(kh * kw, i, o)


def _bn_fold(gamma, beta, mean, var, conv_bias, eps=1e-5):
    scale = gamma / jnp.sqrt(var + eps)
    bias = beta - mean * scale + conv_bias * scale
    return scale.astype(jnp.float32), bias[None, :].astype(jnp.float32)


@functools.partial(jax.jit, static_argnums=(2, 3, 4))
def resblock_forward(x_nchw, params, in_channels, out_channels, stride):
    x = jnp.transpose(x_nchw, (0, 2, 3, 1)).astype(jnp.float32)  # NHWC
    n, h, w, _ = x.shape

    # ---- conv1 (3x3, stride, pad 1) + bn1 + relu --------------------------- #
    s1, b1 = _bn_fold(params["bn1_gamma"], params["bn1_beta"],
                      params["bn1_mean"], params["bn1_var"], params["conv1_b"])
    if stride == 1:
        y1 = _conv3x3_s1(x, _w_as_taps(params["conv1_w"]) * s1, b1,
                         relu=True, out_dtype=jnp.bfloat16)
    else:
        p1, (_, ho, wo) = _im2col(x, 3, stride, 1)
        y1 = _gemm_bias_act(p1, _w_as_matrix(params["conv1_w"]) * s1, b1,
                            relu=True, out_dtype=jnp.bfloat16)
        y1 = y1.reshape(n, ho, wo, out_channels)

    # ---- conv2 (3x3, stride 1) + bn2, fused residual (+bn3), add, relu ----- #
    s2, b2 = _bn_fold(params["bn2_gamma"], params["bn2_beta"],
                      params["bn2_mean"], params["bn2_var"], params["conv2_b"])
    w2 = _w_as_taps(params["conv2_w"]) * s2

    if in_channels != out_channels:
        s3, b3 = _bn_fold(params["bn3_gamma"], params["bn3_beta"],
                          params["bn3_mean"], params["bn3_var"],
                          params["conv3_b"])
        wr = _w_as_matrix(params["conv3_w"]) * s3         # (Cin, Cout), 1x1 conv
        res_lhs = x[:, ::stride, ::stride, :]             # strided 1x1 sampling
        out = _conv3x3_s1(y1, w2, b2 + b3, relu=True, out_dtype=jnp.float32,
                          proj=(res_lhs, wr))
    else:
        if stride != 1:
            raise ValueError("identity skip requires stride == 1 "
                             "(matches the PyTorch module's shape constraint)")
        out = _conv3x3_s1(y1, w2, b2, relu=True, out_dtype=jnp.float32,
                          residual=x)

    return jnp.transpose(out, (0, 3, 1, 2))  # back to NCHW


# ---------------------- deterministic parameter init ----------------------- #

def init_params(key, cin, cout):
    ks = jax.random.split(key, 24)

    def u(k, shape, s):
        return jax.random.uniform(k, shape, jnp.float32, -s, s)

    p = {
        "conv1_w": u(ks[0], (cout, cin, 3, 3), 0.3),
        "conv1_b": u(ks[1], (cout,), 0.1),
        "conv2_w": u(ks[2], (cout, cout, 3, 3), 0.3),
        "conv2_b": u(ks[3], (cout,), 0.1),
        "conv3_w": u(ks[4], (cout, cin, 1, 1), 0.3),
        "conv3_b": u(ks[5], (cout,), 0.1),
    }
    for i, name in enumerate(["bn1", "bn2", "bn3"]):
        p[f"{name}_gamma"] = 1.0 + 0.1 * jax.random.normal(ks[6 + i], (cout,), jnp.float32)
        p[f"{name}_beta"] = 0.05 * jax.random.normal(ks[9 + i], (cout,), jnp.float32)
        p[f"{name}_mean"] = 0.1 * jax.random.normal(ks[12 + i], (cout,), jnp.float32)
        p[f"{name}_var"] = jnp.abs(jax.random.normal(ks[15 + i], (cout,), jnp.float32)) + 0.5
    return p


# ------------------------- pure-JAX reference check ------------------------ #

def _ref_conv(x_nhwc, w_oikk, b, stride, pad):
    w = jnp.transpose(w_oikk, (2, 3, 1, 0))  # HWIO
    y = jax.lax.conv_general_dilated(
        x_nhwc, w, (stride, stride), [(pad, pad), (pad, pad)],
        dimension_numbers=("NHWC", "HWIO", "NHWC"))
    return y + b


def _ref_bn(y, g, be, m, v, eps=1e-5):
    return (y - m) / jnp.sqrt(v + eps) * g + be


def resblock_reference(x_nchw, p, cin, cout, stride):
    x = jnp.transpose(x_nchw, (0, 2, 3, 1)).astype(jnp.float32)
    y = _ref_conv(x, p["conv1_w"], p["conv1_b"], stride, 1)
    y = jax.nn.relu(_ref_bn(y, p["bn1_gamma"], p["bn1_beta"], p["bn1_mean"], p["bn1_var"]))
    y = _ref_conv(y, p["conv2_w"], p["conv2_b"], 1, 1)
    y = _ref_bn(y, p["bn2_gamma"], p["bn2_beta"], p["bn2_mean"], p["bn2_var"])
    if cin != cout:
        r = _ref_conv(x, p["conv3_w"], p["conv3_b"], stride, 0)
        r = _ref_bn(r, p["bn3_gamma"], p["bn3_beta"], p["bn3_mean"], p["bn3_var"])
        y = y + r
    else:
        y = y + x
    y = jax.nn.relu(y)
    return jnp.transpose(y, (0, 3, 1, 2))


# ----------------------------------- main ----------------------------------- #

if __name__ == "__main__":
    key = jax.random.PRNGKey(0)
    configs = [
        # (N, CIN, COUT, H, W, stride)
        (2, 4, 8, 16, 16, 2),   # projection skip + strided conv1 (GEMM path)
        (2, 8, 8, 16, 16, 1),   # identity skip + stride-1 conv1 (in-kernel conv)
    ]
    for cfg_idx, (N, CIN, COUT, H, W, STRIDE) in enumerate(configs):
        k_x, k_p, key = jax.random.split(key, 3)
        x = jax.random.normal(k_x, (N, CIN, H, W), jnp.float32)
        params = init_params(k_p, CIN, COUT)

        out = jax.block_until_ready(resblock_forward(x, params, CIN, COUT, STRIDE))
        ref = jax.block_until_ready(resblock_reference(x, params, CIN, COUT, STRIDE))

        ho = (H - 1) // STRIDE + 1
        wo = (W - 1) // STRIDE + 1
        assert out.shape == (N, COUT, ho, wo), (cfg_idx, out.shape)
        # bf16 MXU inputs / bf16 intermediate vs an all-f32 reference -> loose
        # tolerance (identity skip and accumulation are f32).
        max_diff = float(jnp.max(jnp.abs(out - ref)))
        assert jnp.allclose(out, ref, atol=6e-2, rtol=6e-2), (cfg_idx, max_diff)

    print("KERNEL_OK")
</pallas_src>

<mosaic_0001>
module attributes {stable_mosaic.version = 11 : i64} {
  func.func @_gemm_bias_act_kernel(%arg0: i32, %arg1: i32, %arg2: i32, %arg3: memref<128x128xbf16, #tpu.memory_space<vmem>>, %arg4: memref<128x128xbf16, #tpu.memory_space<vmem>>, %arg5: memref<1x128xf32, #tpu.memory_space<vmem>>, %arg6: memref<128x128xbf16, #tpu.memory_space<vmem>>, %arg7: memref<128x128xf32, #tpu.memory_space<vmem>>) attributes {dimension_semantics = [#tpu.dimension_semantics<parallel>, #tpu.dimension_semantics<parallel>, #tpu.dimension_semantics<arbitrary>], iteration_bounds = array<i64: 1, 1, 1>, scalar_prefetch = 0 : i64, scratch_operands = 1 : i64, tpu.core_type = #tpu.core_type<tc>, window_params = [{transform_indices = @transform_0, window_bounds = array<i64: 128, 128>}, {transform_indices = @transform_1, window_bounds = array<i64: 128, 128>}, {transform_indices = @transform_2, window_bounds = array<i64: 1, 128>}, {transform_indices = @transform_3, window_bounds = array<i64: 128, 128>}]} {
    %c0_i32 = arith.constant 0 : i32
    %0 = arith.cmpi eq, %arg2, %c0_i32 : i32
    %1 = arith.extui %0 : i1 to i32
    %c0_i32_0 = arith.constant 0 : i32
    %2 = arith.cmpi ne, %1, %c0_i32_0 : i32
    scf.if %2 {
      %c0_10 = arith.constant 0 : index
      %c0_11 = arith.constant 0 : index
      %12 = vector.load %arg5[%c0_10, %c0_11] : memref<1x128xf32, #tpu.memory_space<vmem>>, vector<1x128xf32>
      %13 = vector.shape_cast %12 : vector<1x128xf32> to vector<1x128xf32>
      %14 = vector.broadcast %13 : vector<1x128xf32> to vector<128x128xf32>
      %c0_12 = arith.constant 0 : index
      %c0_13 = arith.constant 0 : index
      %15 = vector.load %arg7[%c0_12, %c0_13] : memref<128x128xf32, #tpu.memory_space<vmem>>, vector<128x128xf32>
      tpu.vector_store %arg7[%c0_12, %c0_13], %14 {strides = array<i32>} : memref<128x128xf32, #tpu.memory_space<vmem>>, vector<128x128xf32>,
    } else {
    }
    %c0 = arith.constant 0 : index
    %c0_1 = arith.constant 0 : index
    %3 = vector.load %arg7[%c0, %c0_1] : memref<128x128xf32, #tpu.memory_space<vmem>>, vector<128x128xf32>
    %c0_2 = arith.constant 0 : index
    %c0_3 = arith.constant 0 : index
    %4 = vector.load %arg3[%c0_2, %c0_3] : memref<128x128xbf16, #tpu.memory_space<vmem>>, vector<128x128xbf16>
    %c0_4 = arith.constant 0 : index
    %c0_5 = arith.constant 0 : index
    %5 = vector.load %arg4[%c0_4, %c0_5] : memref<128x128xbf16, #tpu.memory_space<vmem>>, vector<128x128xbf16>
    %cst = arith.constant dense<0.000000e+00> : vector<128x128xf32>
    %6 = tpu.matmul %4, %5, %cst {dimension_numbers = #tpu.dot_dimension_numbers<[1], [0], [0], [1], [0, 0, 1, 1], [], []>} : vector<128x128xbf16>, vector<128x128xbf16>, vector<128x128xf32> -> vector<128x128xf32>
    %7 = arith.addf %3, %6 : vector<128x128xf32>
    %c0_6 = arith.constant 0 : index
    %c0_7 = arith.constant 0 : index
    %8 = vector.load %arg7[%c0_6, %c0_7] : memref<128x128xf32, #tpu.memory_space<vmem>>, vector<128x128xf32>
    tpu.vector_store %arg7[%c0_6, %c0_7], %7 {strides = array<i32>} : memref<128x128xf32, #tpu.memory_space<vmem>>, vector<128x128xf32>,
    %c0_i32_8 = arith.constant 0 : i32
    %9 = arith.cmpi eq, %arg2, %c0_i32_8 : i32
    %10 = arith.extui %9 : i1 to i32
    %c0_i32_9 = arith.constant 0 : i32
    %11 = arith.cmpi ne, %10, %c0_i32_9 : i32
    scf.if %11 {
      %c0_10 = arith.constant 0 : index
      %c0_11 = arith.constant 0 : index
      %12 = vector.load %arg7[%c0_10, %c0_11] : memref<128x128xf32, #tpu.memory_space<vmem>>, vector<128x128xf32>
      %cst_12 = arith.constant 0.000000e+00 : f32
      %13 = vector.broadcast %cst_12 : f32 to vector<128x128xf32>
      %14 = arith.maximumf %12, %13 : vector<128x128xf32>
      %15 = arith.truncf %14 : vector<128x128xf32> to vector<128x128xbf16>
      %c0_13 = arith.constant 0 : index
      %c0_14 = arith.constant 0 : index
      %16 = vector.load %arg6[%c0_13, %c0_14] : memref<128x128xbf16, #tpu.memory_space<vmem>>, vector<128x128xbf16>
      tpu.vector_store %arg6[%c0_13, %c0_14], %15 {strides = array<i32>} : memref<128x128xbf16, #tpu.memory_space<vmem>>, vector<128x128xbf16>,
    } else {
    }
    return
  }
  func.func @transform_0(%arg0: i32, %arg1: i32, %arg2: i32) -> (i32, i32) {
    %c0_i32 = arith.constant 0 : i32
    return %arg0, %arg2 : i32, i32
  }
  func.func @transform_1(%arg0: i32, %arg1: i32, %arg2: i32) -> (i32, i32) {
    %c0_i32 = arith.constant 0 : i32
    return %arg2, %arg1 : i32, i32
  }
  func.func @transform_2(%arg0: i32, %arg1: i32, %arg2: i32) -> (i32, i32) {
    %c0_i32 = arith.constant 0 : i32
    %c0_i32_0 = arith.constant 0 : i32
    return %c0_i32, %arg1 : i32, i32
  }
  func.func @transform_3(%arg0: i32, %arg1: i32, %arg2: i32) -> (i32, i32) {
    %c0_i32 = arith.constant 0 : i32
    return %arg0, %arg1 : i32, i32
  }
}

module attributes {stable_mosaic.version = 11 : i64} {
  func.func @_conv3x3_projres_kernel(%arg0: i32, %arg1: i32, %arg2: memref<1x110x8xbf16, #tpu.memory_space<vmem>>, %arg3: memref<9x8x128xbf16, #tpu.memory_space<vmem>>, %arg4: memref<1x128xf32, #tpu.memory_space<vmem>>, %arg5: memref<1x80x4xbf16, #tpu.memory_space<vmem>>, %arg6: memref<4x128xbf16, #tpu.memory_space<vmem>>, %arg7: memref<1x80x128xf32, #tpu.memory_space<vmem>>) attributes {dimension_semantics = [#tpu.dimension_semantics<parallel>, #tpu.dimension_semantics<parallel>], iteration_bounds = array<i64: 2, 1>, scalar_prefetch = 0 : i64, scratch_operands = 0 : i64, tpu.core_type = #tpu.core_type<tc>, window_params = [{transform_indices = @transform_0, window_bounds = array<i64: 1, 110, 8>}, {transform_indices = @transform_1, window_bounds = array<i64: 9, 8, 128>}, {transform_indices = @transform_2, window_bounds = array<i64: 1, 128>}, {transform_indices = @transform_3, window_bounds = array<i64: 1, 80, 4>}, {transform_indices = @transform_4, window_bounds = array<i64: 4, 128>}, {transform_indices = @transform_5, window_bounds = array<i64: 1, 80, 128>}]} {
    %c0 = arith.constant 0 : index
    %c0_0 = arith.constant 0 : index
    %c0_1 = arith.constant 0 : index
    %0 = vector.load %arg2[%c0, %c0_0, %c0_1] : memref<1x110x8xbf16, #tpu.memory_space<vmem>>, vector<1x80x8xbf16>
    %1 = vector.shape_cast %0 : vector<1x80x8xbf16> to vector<80x8xbf16>
    %c0_2 = arith.constant 0 : index
    %c0_3 = arith.constant 0 : index
    %c0_4 = arith.constant 0 : index
    %2 = vector.load %arg3[%c0_2, %c0_3, %c0_4] : memref<9x8x128xbf16, #tpu.memory_space<vmem>>, vector<1x8x128xbf16>
    %3 = vector.shape_cast %2 : vector<1x8x128xbf16> to vector<8x128xbf16>
    %cst = arith.constant dense<0.000000e+00> : vector<80x128xf32>
    %4 = tpu.matmul %1, %3, %cst {dimension_numbers = #tpu.dot_dimension_numbers<[1], [0], [0], [1], [0, 0, 1, 1], [], []>} : vector<80x8xbf16>, vector<8x128xbf16>, vector<80x128xf32> -> vector<80x128xf32>
    %c0_5 = arith.constant 0 : index
    %c1 = arith.constant 1 : index
    %c0_6 = arith.constant 0 : index
    %5 = vector.load %arg2[%c0_5, %c1, %c0_6] : memref<1x110x8xbf16, #tpu.memory_space<vmem>>, vector<1x80x8xbf16>
    %6 = vector.shape_cast %5 : vector<1x80x8xbf16> to vector<80x8xbf16>
    %c1_7 = arith.constant 1 : index
    %c0_8 = arith.constant 0 : index
    %c0_9 = arith.constant 0 : index
    %7 = vector.load %arg3[%c1_7, %c0_8, %c0_9] : memref<9x8x128xbf16, #tpu.memory_space<vmem>>, vector<1x8x128xbf16>
    %8 = vector.shape_cast %7 : vector<1x8x128xbf16> to vector<8x128xbf16>
    %cst_10 = arith.constant dense<0.000000e+00> : vector<80x128xf32>
    %9 = tpu.matmul %6, %8, %cst_10 {dimension_numbers = #tpu.dot_dimension_numbers<[1], [0], [0], [1], [0, 0, 1, 1], [], []>} : vector<80x8xbf16>, vector<8x128xbf16>, vector<80x128xf32> -> vector<80x128xf32>
    %10 = arith.addf %4, %9 : vector<80x128xf32>
    %c0_11 = arith.constant 0 : index
    %c2 = arith.constant 2 : index
    %c0_12 = arith.constant 0 : index
    %11 = vector.load %arg2[%c0_11, %c2, %c0_12] : memref<1x110x8xbf16, #tpu.memory_space<vmem>>, vector<1x80x8xbf16>
    %12 = vector.shape_cast %11 : vector<1x80x8xbf16> to vector<80x8xbf16>
    %c2_13 = arith.constant 2 : index
    %c0_14 = arith.constant 0 : index
    %c0_15 = arith.constant 0 : index
    %13 = vector.load %arg3[%c2_13, %c0_14, %c0_15] : memref<9x8x128xbf16, #tpu.memory_space<vmem>>, vector<1x8x128xbf16>
    %14 = vector.shape_cast %13 : vector<1x8x128xbf16> to vector<8x128xbf16>
    %cst_16 = arith.constant dense<0.000000e+00> : vector<80x128xf32>
    %15 = tpu.matmul %12, %14, %cst_16 {dimension_numbers = #tpu.dot_dimension_numbers<[1], [0], [0], [1], [0, 0, 1, 1], [], []>} : vector<80x8xbf16>, vector<8x128xbf16>, vector<80x128xf32> -> vector<80x128xf32>
    %16 = arith.addf %10, %15 : vector<80x128xf32>
    %c0_17 = arith.constant 0 : index
    %c10 = arith.constant 10 : index
    %c0_18 = arith.constant 0 : index
    %17 = vector.load %arg2[%c0_17, %c10, %c0_18] : memref<1x110x8xbf16, #tpu.memory_space<vmem>>, vector<1x80x8xbf16>
    %18 = vector.shape_cast %17 : vector<1x80x8xbf16> to vector<80x8xbf16>
    %c3 = arith.constant 3 : index
    %c0_19 = arith.constant 0 : index
    %c0_20 = arith.constant 0 : index
    %19 = vector.load %arg3[%c3, %c0_19, %c0_20] : memref<9x8x128xbf16, #tpu.memory_space<vmem>>, vector<1x8x128xbf16>
    %20 = vector.shape_cast %19 : vector<1x8x128xbf16> to vector<8x128xbf16>
    %cst_21 = arith.constant dense<0.000000e+00> : vector<80x128xf32>
    %21 = tpu.matmul %18, %20, %cst_21 {dimension_numbers = #tpu.dot_dimension_numbers<[1], [0], [0], [1], [0, 0, 1, 1], [], []>} : vector<80x8xbf16>, vector<8x128xbf16>, vector<80x128xf32> -> vector<80x128xf32>
    %22 = arith.addf %16, %21 : vector<80x128xf32>
    %c0_22 = arith.constant 0 : index
    %c11 = arith.constant 11 : index
    %c0_23 = arith.constant 0 : index
    %23 = vector.load %arg2[%c0_22, %c11, %c0_23] : memref<1x110x8xbf16, #tpu.memory_space<vmem>>, vector<1x80x8xbf16>
    %24 = vector.shape_cast %23 : vector<1x80x8xbf16> to vector<80x8xbf16>
    %c4 = arith.constant 4 : index
    %c0_24 = arith.constant 0 : index
    %c0_25 = arith.constant 0 : index
    %25 = vector.load %arg3[%c4, %c0_24, %c0_25] : memref<9x8x128xbf16, #tpu.memory_space<vmem>>, vector<1x8x128xbf16>
    %26 = vector.shape_cast %25 : vector<1x8x128xbf16> to vector<8x128xbf16>
    %cst_26 = arith.constant dense<0.000000e+00> : vector<80x128xf32>
    %27 = tpu.matmul %24, %26, %cst_26 {dimension_numbers = #tpu.dot_dimension_numbers<[1], [0], [0], [1], [0, 0, 1, 1], [], []>} : vector<80x8xbf16>, vector<8x128xbf16>, vector<80x128xf32> -> vector<80x128xf32>
    %28 = arith.addf %22, %27 : vector<80x128xf32>
    %c0_27 = arith.constant 0 : index
    %c12 = arith.constant 12 : index
    %c0_28 = arith.constant 0 : index
    %29 = vector.load %arg2[%c0_27, %c12, %c0_28] : memref<1x110x8xbf16, #tpu.memory_space<vmem>>, vector<1x80x8xbf16>
    %30 = vector.shape_cast %29 : vector<1x80x8xbf16> to vector<80x8xbf16>
    %c5 = arith.constant 5 : index
    %c0_29 = arith.constant 0 : index
    %c0_30 = arith.constant 0 : index
    %31 = vector.load %arg3[%c5, %c0_29, %c0_30] : memref<9x8x128xbf16, #tpu.memory_space<vmem>>, vector<1x8x128xbf16>
    %32 = vector.shape_cast %31 : vector<1x8x128xbf16> to vector<8x128xbf16>
    %cst_31 = arith.constant dense<0.000000e+00> : vector<80x128xf32>
    %33 = tpu.matmul %30, %32, %cst_31 {dimension_numbers = #tpu.dot_dimension_numbers<[1], [0], [0], [1], [0, 0, 1, 1], [], []>} : vector<80x8xbf16>, vector<8x128xbf16>, vector<80x128xf32> -> vector<80x128xf32>
    %34 = arith.addf %28, %33 : vector<80x128xf32>
    %c0_32 = arith.constant 0 : index
    %c20 = arith.constant 20 : index
    %c0_33 = arith.constant 0 : index
    %35 = vector.load %arg2[%c0_32, %c20, %c0_33] : memref<1x110x8xbf16, #tpu.memory_space<vmem>>, vector<1x80x8xbf16>
    %36 = vector.shape_cast %35 : vector<1x80x8xbf16> to vector<80x8xbf16>
    %c6 = arith.constant 6 : index
    %c0_34 = arith.constant 0 : index
    %c0_35 = arith.constant 0 : index
    %37 = vector.load %arg3[%c6, %c0_34, %c0_35] : memref<9x8x128xbf16, #tpu.memory_space<vmem>>, vector<1x8x128xbf16>
    %38 = vector.shape_cast %37 : vector<1x8x128xbf16> to vector<8x128xbf16>
    %cst_36 = arith.constant dense<0.000000e+00> : vector<80x128xf32>
    %39 = tpu.matmul %36, %38, %cst_36 {dimension_numbers = #tpu.dot_dimension_numbers<[1], [0], [0], [1], [0, 0, 1, 1], [], []>} : vector<80x8xbf16>, vector<8x128xbf16>, vector<80x128xf32> -> vector<80x128xf32>
    %40 = arith.addf %34, %39 : vector<80x128xf32>
    %c0_37 = arith.constant 0 : index
    %c21 = arith.constant 21 : index
    %c0_38 = arith.constant 0 : index
    %41 = vector.load %arg2[%c0_37, %c21, %c0_38] : memref<1x110x8xbf16, #tpu.memory_space<vmem>>, vector<1x80x8xbf16>
    %42 = vector.shape_cast %41 : vector<1x80x8xbf16> to vector<80x8xbf16>
    %c7 = arith.constant 7 : index
    %c0_39 = arith.constant 0 : index
    %c0_40 = arith.constant 0 : index
    %43 = vector.load %arg3[%c7, %c0_39, %c0_40] : memref<9x8x128xbf16, #tpu.memory_space<vmem>>, vector<1x8x128xbf16>
    %44 = vector.shape_cast %43 : vector<1x8x128xbf16> to vector<8x128xbf16>
    %cst_41 = arith.constant dense<0.000000e+00> : vector<80x128xf32>
    %45 = tpu.matmul %42, %44, %cst_41 {dimension_numbers = #tpu.dot_dimension_numbers<[1], [0], [0], [1], [0, 0, 1, 1], [], []>} : vector<80x8xbf16>, vector<8x128xbf16>, vector<80x128xf32> -> vector<80x128xf32>
    %46 = arith.addf %40, %45 : vector<80x128xf32>
    %c0_42 = arith.constant 0 : index
    %c22 = arith.constant 22 : index
    %c0_43 = arith.constant 0 : index
    %47 = vector.load %arg2[%c0_42, %c22, %c0_43] : memref<1x110x8xbf16, #tpu.memory_space<vmem>>, vector<1x80x8xbf16>
    %48 = vector.shape_cast %47 : vector<1x80x8xbf16> to vector<80x8xbf16>
    %c8 = arith.constant 8 : index
    %c0_44 = arith.constant 0 : index
    %c0_45 = arith.constant 0 : index
    %49 = vector.load %arg3[%c8, %c0_44, %c0_45] : memref<9x8x128xbf16, #tpu.memory_space<vmem>>, vector<1x8x128xbf16>
    %50 = vector.shape_cast %49 : vector<1x8x128xbf16> to vector<8x128xbf16>
    %cst_46 = arith.constant dense<0.000000e+00> : vector<80x128xf32>
    %51 = tpu.matmul %48, %50, %cst_46 {dimension_numbers = #tpu.dot_dimension_numbers<[1], [0], [0], [1], [0, 0, 1, 1], [], []>} : vector<80x8xbf16>, vector<8x128xbf16>, vector<80x128xf32> -> vector<80x128xf32>
    %52 = arith.addf %46, %51 : vector<80x128xf32>
    %c0_47 = arith.constant 0 : index
    %c0_48 = arith.constant 0 : index
    %53 = vector.load %arg4[%c0_47, %c0_48] : memref<1x128xf32, #tpu.memory_space<vmem>>, vector<1x128xf32>
    %54 = vector.broadcast %53 : vector<1x128xf32> to vector<80x128xf32>
    %55 = arith.addf %52, %54 : vector<80x128xf32>
    %c0_49 = arith.constant 0 : index
    %c0_50 = arith.constant 0 : index
    %c0_51 = arith.constant 0 : index
    %56 = vector.load %arg5[%c0_49, %c0_50, %c0_51] : memref<1x80x4xbf16, #tpu.memory_space<vmem>>, vector<1x80x4xbf16>
    %57 = vector.shape_cast %56 : vector<1x80x4xbf16> to vector<80x4xbf16>
    %c0_52 = arith.constant 0 : index
    %c0_53 = arith.constant 0 : index
    %58 = vector.load %arg6[%c0_52, %c0_53] : memref<4x128xbf16, #tpu.memory_space<vmem>>, vector<4x128xbf16>
    %cst_54 = arith.constant dense<0.000000e+00> : vector<80x128xf32>
    %59 = tpu.matmul %57, %58, %cst_54 {dimension_numbers = #tpu.dot_dimension_numbers<[1], [0], [0], [1], [0, 0, 1, 1], [], []>} : vector<80x4xbf16>, vector<4x128xbf16>, vector<80x128xf32> -> vector<80x128xf32>
    %60 = arith.addf %55, %59 : vector<80x128xf32>
    %cst_55 = arith.constant 0.000000e+00 : f32
    %61 = vector.broadcast %cst_55 : f32 to vector<80x128xf32>
    %62 = arith.maximumf %60, %61 : vector<80x128xf32>
    %c0_56 = arith.constant 0 : index
    %c0_57 = arith.constant 0 : index
    %c0_58 = arith.constant 0 : index
    %63 = vector.load %arg7[%c0_56, %c0_57, %c0_58] : memref<1x80x128xf32, #tpu.memory_space<vmem>>, vector<1x80x128xf32>
    %64 = vector.shape_cast %63 : vector<1x80x128xf32> to vector<80x128xf32>
    %65 = vector.shape_cast %62 : vector<80x128xf32> to vector<1x80x128xf32>
    tpu.vector_store %arg7[%c0_56, %c0_57, %c0_58], %65 {strides = array<i32>} : memref<1x80x128xf32, #tpu.memory_space<vmem>>, vector<1x80x128xf32>,
    return
  }
  func.func @transform_0(%arg0: i32, %arg1: i32) -> (i32, i32, i32) {
    %c0_i32 = arith.constant 0 : i32
    %c0_i32_0 = arith.constant 0 : i32
    %c0_i32_1 = arith.constant 0 : i32
    return %arg0, %c0_i32, %c0_i32_0 : i32, i32, i32
  }
  func.func @transform_1(%arg0: i32, %arg1: i32) -> (i32, i32, i32) {
    %c0_i32 = arith.constant 0 : i32
    %c0_i32_0 = arith.constant 0 : i32
    %c0_i32_1 = arith.constant 0 : i32
    return %c0_i32, %c0_i32_0, %arg1 : i32, i32, i32
  }
  func.func @transform_2(%arg0: i32, %arg1: i32) -> (i32, i32) {
    %c0_i32 = arith.constant 0 : i32
    %c0_i32_0 = arith.constant 0 : i32
    return %c0_i32, %arg1 : i32, i32
  }
  func.func @transform_3(%arg0: i32, %arg1: i32) -> (i32, i32, i32) {
    %c0_i32 = arith.constant 0 : i32
    %c0_i32_0 = arith.constant 0 : i32
    %c0_i32_1 = arith.constant 0 : i32
    return %arg0, %c0_i32, %c0_i32_0 : i32, i32, i32
  }
  func.func @transform_4(%arg0: i32, %arg1: i32) -> (i32, i32) {
    %c0_i32 = arith.constant 0 : i32
    %c0_i32_0 = arith.constant 0 : i32
    return %c0_i32, %arg1 : i32, i32
  }
  func.func @transform_5(%arg0: i32, %arg1: i32) -> (i32, i32, i32) {
    %c0_i32 = arith.constant 0 : i32
    %c0_i32_0 = arith.constant 0 : i32
    return %arg0, %c0_i32, %arg1 : i32, i32, i32
  }
}

</mosaic_0001>

<bundles_post_ra>
// kernel: resblock_forward.2
= control target key start
LH: loop header
LB: loop body
LE: loop exit
PB: predicated region body
PF: predicated region fallthrough
CT: control target
= control target key end

     0   :  { %s705_s1 = inlined_call_operand.vmem [shape: bf16[128,128], index: 1, kind: input, shape index: {}]   ;;  %s706_s0 = inlined_call_operand.vmem [shape: bf16[128,128], index: 0, kind: input, shape index: {}]   ;;  %s707_s2 = inlined_call_operand.vmem [shape: f32[1,128], index: 2, kind: input, shape index: {}]   ;;  %s708_s3 = inlined_call_operand.vmem [shape: bf16[128,128], index: 3, kind: output, shape index: {}]  }
   0x1   :  { %v594_v0 = vld [vmem:[%s705_s1] sm:$0xff]   ;;  %v595_v1 = vld [vmem:[%s705_s1 + $0x8] sm:$0xff]   ;;  %v596_v2 = vld [vmem:[%s705_s1 + $0x10] sm:$0xff]  }
   0x2   :  { %546 = vmatprep.subr.bf16.mxu0 %v594_v0  ;;  %578 = vmatprep.subr.bf16.mxu1 %v594_v0  ;;  %v597_v3 = vld [vmem:[%s705_s1 + $0x18] sm:$0xff]   ;;  %v602_v4 = vld [vmem:[%s706_s0] sm:$0xff]   ;;  %v599_v7 = vld [vmem:[%s705_s1 + $0x28] sm:$0xff]  }
   0x3   :  { %547 = vmatpush3.bf16.msra.mxu0 %v594_v0  ;;  %586 = vmatpush3.bf16.msra.mxu1 %v594_v0  ;;  %v603_v5 = vld [vmem:[%s706_s0 + $0x20] sm:$0xff]   ;;  %v600_v8 = vld [vmem:[%s705_s1 + $0x30] sm:$0xff]   ;;  %v601_v9 = vld [vmem:[%s705_s1 + $0x38] sm:$0xff]  }
   0x4   :  { %548 = vmatprep.subr.bf16.mxu0 %v595_v1  ;;  %579 = vmatprep.subr.bf16.mxu1 %v595_v1  ;;  %v598_v6 = vld [vmem:[%s705_s1 + $0x20] sm:$0xff]   ;;  %v604_v10 = vld [vmem:[%s706_s0 + $0x8] sm:$0xff]   ;;  %v606_v12 = vld [vmem:[%s706_s0 + $0x10] sm:$0xff]  }
   0x5   :  { %562 = vmatprep.mubr.bf16.mxu0 %v602_v4  ;;  %570 = vmatprep.mubr.bf16.mxu1 %v603_v5  ;;  %v605_v11 = vld [vmem:[%s706_s0 + $0x28] sm:$0xff]   ;;  %v607_v13 = vld [vmem:[%s706_s0 + $0x30] sm:$0xff]   ;;  %v608_v14 = vld [vmem:[%s706_s0 + $0x18] sm:$0xff]  }
   0x6   :  { %v609_v15 = vld [vmem:[%s706_s0 + $0x38] sm:$0xff]   ;;  %v434_v16 = vld [vmem:[%s707_s2] ss:$0 sm:$0xff] }
   0x7   :  { %549 = vmatpush3.bf16.msra.mxu0 %v595_v1  ;;  %587 = vmatpush3.bf16.msra.mxu1 %v595_v1 }
   0x8   :  { %550 = vmatprep.subr.bf16.mxu0 %v596_v2  ;;  %580 = vmatprep.subr.bf16.mxu1 %v596_v2 }
   0xb   :  { %551 = vmatpush3.bf16.msra.mxu0 %v596_v2  ;;  %588 = vmatpush3.bf16.msra.mxu1 %v596_v2 }
   0xc   :  { %552 = vmatprep.subr.bf16.mxu0 %v597_v3  ;;  %581 = vmatprep.subr.bf16.mxu1 %v597_v3 }
   0xf   :  { %553 = vmatpush3.bf16.msra.mxu0 %v597_v3  ;;  %589 = vmatpush3.bf16.msra.mxu1 %v597_v3 }
  0x10   :  { %554 = vmatprep.subr.bf16.mxu0 %v598_v6  ;;  %582 = vmatprep.subr.bf16.mxu1 %v598_v6 }
  0x13   :  { %555 = vmatpush3.bf16.msra.mxu0 %v598_v6  ;;  %590 = vmatpush3.bf16.msra.mxu1 %v598_v6 }
  0x14   :  { %556 = vmatprep.subr.bf16.mxu0 %v599_v7  ;;  %583 = vmatprep.subr.bf16.mxu1 %v599_v7 }
  0x17   :  { %557 = vmatpush3.bf16.msra.mxu0 %v599_v7  ;;  %591 = vmatpush3.bf16.msra.mxu1 %v599_v7 }
  0x18   :  { %558 = vmatprep.subr.bf16.mxu0 %v600_v8  ;;  %584 = vmatprep.subr.bf16.mxu1 %v600_v8 }
  0x1b   :  { %559 = vmatpush3.bf16.msra.mxu0 %v600_v8  ;;  %592 = vmatpush3.bf16.msra.mxu1 %v600_v8 }
  0x1c   :  { %560 = vmatprep.subr.bf16.mxu0 %v601_v9  ;;  %585 = vmatprep.subr.bf16.mxu1 %v601_v9 }
  0x1f   :  { %561 = vmatpush3.bf16.msra.mxu0 %v601_v9  ;;  %593 = vmatpush3.bf16.msra.mxu1 %v601_v9 }
  0x22   :  { %563 = vmatmul.mubr.bf16.vlgmr.msra.gmra.mrb[0].mxu0 %v604_v10  ;;  %571 = vmatmul.mubr.bf16.vlgmr.msra.gmra.mrb[0].mxu1 %v605_v11 }
  0x23   :  { %566 = vmatprep.mubr.bf16.mxu0 %v606_v12  ;;  %574 = vmatprep.mubr.bf16.mxu1 %v607_v13 }
  0x2a   :  { %567 = vmatmul.mubr.bf16.gmra.mrb[4].mxu0 %v608_v14  ;;  %575 = vmatmul.mubr.bf16.gmra.mrb[4].mxu1 %v609_v15 }
  0xf5   :  { %v564_v17 = vpop.f32.mrb[0].mxu0  ;;  %v572_v18 = vpop.f32.mrb[0].mxu1 }
  0xf6   :  { %v285_v19 = vadd.f32 %v564_v17, %v434_v16  ;;  %v293_v20 = vadd.f32 %v572_v18, %v434_v16  ;;  %v220_v21 = vpop.f32.mrb[1].mxu0  ;;  %v252_v22 = vpop.f32.mrb[1].mxu1 }
  0xf7   :  { %v283_v23 = vadd.f32 %v434_v16, %v220_v21  ;;  %v291_v24 = vadd.f32 %v434_v16, %v252_v22  ;;  %v565_v25 = vpop.f32.mrb[2].mxu0  ;;  %v573_v26 = vpop.f32.mrb[2].mxu1 }
  0xf8   :  { %v286_v27 = vadd.f32 %v565_v25, %v434_v16  ;;  %v294_v28 = vadd.f32 %v573_v26, %v434_v16  ;;  %v223_v29 = vpop.f32.mrb[3].mxu0  ;;  %v255_v30 = vpop.f32.mrb[3].mxu1  ;;  %v336_v33 = vmax.f32 %v285_v19, 0.0  ;;  %v344_v34 = vmax.f32 %v293_v20, 0.0 }
  0xf9   :  { %v284_v31 = vadd.f32 %v434_v16, %v223_v29  ;;  %v292_v32 = vadd.f32 %v434_v16, %v255_v30  ;;  %v334_v37 = vmax.f32 %v283_v23, 0.0  ;;  %v342_v38 = vmax.f32 %v291_v24, 0.0 }
  0xfa   :  { %v337_v35 = vmax.f32 %v286_v27, 0.0  ;;  %v345_v36 = vmax.f32 %v294_v28, 0.0 }
  0xfb   :  { %v335_v39 = vmax.f32 %v284_v31, 0.0  ;;  %v343_v40 = vmax.f32 %v292_v32, 0.0 }
  0xfc   :  { %v491_v41 = vpack.c.bf16 %v337_v35, %v336_v33  ;;  %v511_v42 = vpack.c.bf16 %v345_v36, %v344_v34 }
  0xfd   :  { %v486_v43 = vpack.c.bf16 %v335_v39, %v334_v37  ;;  %v506_v44 = vpack.c.bf16 %v343_v40, %v342_v38  ;;  %v568_v45 = vpop.f32.mrb[4].mxu0  ;;  %v576_v46 = vpop.f32.mrb[4].mxu1 }
  0xfe   :  { %523 = vst [vmem:[%s708_s3 + $0x8] sm:$0xff] %v491_v41   ;;  %527 = vst [vmem:[%s708_s3 + $0x28] sm:$0xff] %v511_v42   ;;  %v289_v47 = vadd.f32 %v568_v45, %v434_v16  ;;  %v297_v48 = vadd.f32 %v576_v46, %v434_v16  ;;  %v236_v49 = vpop.f32.mrb[5].mxu0  ;;  %v268_v50 = vpop.f32.mrb[5].mxu1 }
  0xff   :  { %487 = vst [vmem:[%s708_s3] sm:$0xff] %v486_v43   ;;  %526 = vst [vmem:[%s708_s3 + $0x20] sm:$0xff] %v506_v44   ;;  %v287_v51 = vadd.f32 %v434_v16, %v236_v49  ;;  %v295_v52 = vadd.f32 %v434_v16, %v268_v50  ;;  %v569_v53 = vpop.f32.mrb[6].mxu0  ;;  %v577_v54 = vpop.f32.mrb[6].mxu1 }
 0x100   :  { %v290_v55 = vadd.f32 %v569_v53, %v434_v16  ;;  %v298_v56 = vadd.f32 %v577_v54, %v434_v16  ;;  %v239_v57 = vpop.f32.mrb[7].mxu0  ;;  %v271_v58 = vpop.f32.mrb[7].mxu1  ;;  %v340_v61 = vmax.f32 %v289_v47, 0.0  ;;  %v348_v62 = vmax.f32 %v297_v48, 0.0 }
 0x101   :  { %v288_v59 = vadd.f32 %v434_v16, %v239_v57  ;;  %v296_v60 = vadd.f32 %v434_v16, %v271_v58  ;;  %v338_v1 = vmax.f32 %v287_v51, 0.0  ;;  %v346_v2 = vmax.f32 %v295_v52, 0.0 }
 0x102   :  { %v341_v63 = vmax.f32 %v290_v55, 0.0  ;;  %v349_v0 = vmax.f32 %v298_v56, 0.0 }
 0x103   :  { %v339_v3 = vmax.f32 %v288_v59, 0.0  ;;  %v347_v4 = vmax.f32 %v296_v60, 0.0 }
 0x104   :  { %v501_v5 = vpack.c.bf16 %v341_v63, %v340_v61  ;;  %v521_v6 = vpack.c.bf16 %v349_v0, %v348_v62 }
 0x105   :  { %v496_v7 = vpack.c.bf16 %v339_v3, %v338_v1  ;;  %v516_v8 = vpack.c.bf16 %v347_v4, %v346_v2 }
 0x106   :  { %525 = vst [vmem:[%s708_s3 + $0x18] sm:$0xff] %v501_v5   ;;  %529 = vst [vmem:[%s708_s3 + $0x38] sm:$0xff] %v521_v6  }
 0x107   :  { %524 = vst [vmem:[%s708_s3 + $0x10] sm:$0xff] %v496_v7   ;;  %528 = vst [vmem:[%s708_s3 + $0x30] sm:$0xff] %v516_v8  }

// kernel: resblock_forward.3
= control target key start
LH: loop header
LB: loop body
LE: loop exit
PB: predicated region body
PF: predicated region fallthrough
CT: control target
= control target key end

     0   :  { %s2546_s18 = smov 0   ;;  %s2548_s19 = smov 0   ;;  %s3054_s0 = inlined_call_operand.vmem [shape: bf16[2,110,8], index: 0, kind: input, shape index: {}]   ;;  %s3055_s1 = inlined_call_operand.vmem [shape: bf16[9,8,128], index: 1, kind: input, shape index: {}]   ;;  %s3056_s2 = inlined_call_operand.vmem [shape: f32[1,128], index: 2, kind: input, shape index: {}]   ;;  %s3057_s3 = inlined_call_operand.vmem [shape: bf16[2,80,4], index: 3, kind: input, shape index: {}]   ;;  %s3058_s4 = inlined_call_operand.vmem [shape: bf16[4,128], index: 4, kind: input, shape index: {}]   ;;  %s3059_s5 = inlined_call_operand.vmem [shape: f32[2,80,128], index: 5, kind: output, shape index: {}]  }
   0x1   :  { %s2550_s20 = smov 0  }
   0x2 LB: > { %s27_s21 = sadd.s32 1, %s2508_s19  ;;  %p1880_p0 = scmp.ge.s32.totalorder %s2512_s20, 1  ;;  %s2512_s20 = sphi %s2550_s20, %s15_s20   ;;  %s2508_s19 = sphi %s2548_s19, %s3061_s19   ;;  %s2504_s18 = sphi %s2546_s18, %s3060_s18  }
   0x3   : > { %p29_p1 = scmp.ge.s32.totalorder %s27_s21, 2  ;;  %p237_p2 = scmp.lt.s32.totalorder %s2512_s20, 3 }
   0x5   : > { %s3063_s21 = smov (%p29_p1, %s27_s21), 0  ;;  %p238_p3 = pnand %p1880_p0, %p237_p2 }
   0x6   : > { %vm417_vm0 = vcmask (!%p238_p3), 1043456   ;;  %v1927_v0 = vld [vmem:[%s3055_s1 + $0x14] sm:$0xf] (!%p238_p3)  ;;  %p284_p4 = scmp.lt.s32.totalorder (!%p238_p3), %s2504_s18, 1  ;;  %v2514_v1 = vmov (!%p238_p3), 0.0   ;;  %vm2515_vm1 = vmmov (!%p238_p3), 0  }
   0x7   : > { %241 = sbr.rel (%p238_p3) target bundleno = 443 (0x1bb), region = 40  ;;  %2143 = vmatprep.subr.bf16.mxu0 (!%p238_p3), %v2514_v1  ;;  %v1047_v2 = vsel (!%p238_p3), %vm417_vm0, %v1927_v0, 0  ;;  %2033 = vmatprep.subr.bf16.mxu1 (!%p238_p3), %v2514_v1  ;;  %v1884_v3 = vld [vmem:[%s3055_s1 + $0x4] sm:$0xf] (!%p238_p3)  ;;  %v1934_v5 = vld [vmem:[%s3055_s1 + $0x18] sm:$0xf] (!%p238_p3) }
   0x8   : > { %2144 = vmatpush3.bf16.msra.mxu0 (!%p238_p3), %v1047_v2  ;;  %2145 = vmatprep.mubr.msk.bf16.mxu0 (!%p238_p3), %vm2515_vm1, %v2514_v1  ;;  %v419_v4 = vsel (!%p238_p3), %vm417_vm0, %v1884_v3, 0  ;;  %vm401_vm2 = vcmask (!%p238_p3), 64512   ;;  %vm1019_vm3 = vcmask (!%p238_p3), 1045504   ;;  %v1200_v17 = vsel (!%p238_p3), %vm417_vm0, %v1934_v5, 0  ;;  %v324_v27 = vld [vmem:[%s3055_s1] sm:$0xf] (!%p238_p3) }
   0x9   : > { %2034 = vmatpush3.bf16.msra.mxu1 (!%p238_p3), %v419_v4  ;;  %2035 = vmatprep.mubr.msk.bf16.mxu1 (!%p238_p3), %vm2515_vm1, %v2514_v1  ;;  %vm356_vm4 = vsmask.f32 (!%p238_p3), 7424  ;;  %v505_v32 = vsel (!%p238_p3), %vm417_vm0, %v324_v27, 0  ;;  %vm586_vm5 = vcmask (!%p238_p3), 1046528   ;;  %vm1452_vm6 = vcmask (!%p238_p3), 1044480  }
   0xa   : > { %2055 = vmatprep.subr.bf16.mxu1 (!%p238_p3), %v2514_v1  ;;  %2165 = vmatprep.subr.bf16.mxu0 (!%p238_p3), %v2514_v1  ;;  %vm858_vm7 = vsmask.f32 (!%p238_p3), 6400  ;;  %vm1291_vm8 = vsmask.f32 (!%p238_p3), 5376  ;;  %vm1634_vm9 = vcmask (!%p238_p3), 1041408   ;;  %vm1618_vm10 = vcmask (!%p238_p3), 31744  }
   0xe   : > { %s3065_s18 = smov (!%p284_p4, %s2504_s18), 1 }
   0xf   : > { %s2433_s26 = smul.u32 56, %s3065_s18 }
  0x10   : > { %s2434_s9 = smul.u32 40, %s3065_s18 }
  0x11   : > { %s2586_s29 = scalar_lea.vmem %s3054_s0, %s2433_s26  ;;  %s2435_s6 = smul.u32 80, %s3065_s18 }
  0x12   : > { %v699_v6 = vld [vmem:[%s2586_s29 + $0x4] sm:$0xe]  ;;  %v700_v7 = vld [vmem:[%s2586_s29 + $0x8] sm:$0xf]  ;;  %v2596_v9 = vld [vmem:[%s2586_s29 + $0xc] sm:$0xff]   ;;  %s2760_s12 = scalar_lea.vmem %s3057_s3, %s2434_s9 }
  0x13   : > { %v2593_v8 = vcombine.low %v699_v6, %v700_v7  ;;  %v1013_v10 = vld [vmem:[%s2586_s29 + $0x4] sm:$0xc]  ;;  %v314_v12 = vld [vmem:[%s2586_s29] sm:$0xf]  ;;  %v1021_v14 = vrot.slane %v2596_v9, 2  ;;  %v2605_v16 = vld [vmem:[%s2586_s29 + $0x8] sm:$0xff]   ;;  %s3025_s9 = scalar_lea.vmem %s3059_s5, %s2435_s6 }
  0x14   : > { %v1928_v11 = vcombine.low %v1013_v10, %v700_v7  ;;  %v315_v13 = vld [vmem:[%s2586_s29 + $0x4] sm:$0xf]  ;;  %v2609_v19 = vld [vmem:[%s2586_s29 + $0x14] sm:$0xff]   ;;  %v365_v22 = vshll.u32 %v2605_v16, 16  ;;  %v369_v30 = vshrl.u32 %v2605_v16, 16  ;;  %v2633_v35 = vld [vmem:[%s2586_s29 + $0x1c] sm:$0xff]  }
  0x15   : > { %v2602_v15 = vcombine.low %v314_v12, %v315_v13  ;;  %v2615_v23 = vld [vmem:[%s2586_s29 + $0x10] sm:$0xff]   ;;  %v1023_v28 = vrot.slane %v2609_v19, 2  ;;  %v2638_v38 = vld [vmem:[%s2586_s29 + $0x18] sm:$0xff]   ;;  %v1025_v39 = vrot.slane %v2633_v35, 2  ;;  %v2649_v43 = vld [vmem:[%s2586_s29 + $0x20] sm:$0xff]   ;;  %v588_v57 = vrot.slane %v2605_v16, 1 }
  0x16   : > { %v1020_v18 = vrot.slane %v1928_v11, 2  ;;  %v367_v26 = vrot.slane %v365_v22, 1  ;;  %v373_v31 = vshll.u32 %v2615_v23, 16  ;;  %v377_v41 = vshrl.u32 %v2615_v23, 16  ;;  %v2652_v44 = vld [vmem:[%s2586_s29 + $0x28] sm:$0xff]   ;;  %v2666_v53 = vld [vmem:[%s2586_s29 + $0x20] sm:$0xff]  }
  0x17   : > { %v358_v20 = vshrl.u32 %v2602_v15, 16  ;;  %v360_v21 = vshll.u32 %v2602_v15, 16  ;;  %v1024_v34 = vsel %vm1019_vm3, %v1021_v14, %v1023_v28  ;;  %v381_v42 = vshll.u32 %v2638_v38, 16  ;;  %v580_v47 = vld [vmem:[%s2586_s29] sm:$0xe]  ;;  %v2660_v49 = vld [vmem:[%s2586_s29 + $0x24] sm:$0xff]  }
  0x18   : > { %v1022_v24 = vsel %vm1019_vm3, %v1020_v18, %v1021_v14  ;;  %v371_v36 = vor.u32 %v369_v30, %v367_v26  ;;  %v375_v37 = vrot.slane %v373_v31, 1  ;;  %v1178_v45 = vrot.slane %v2649_v43, 2  ;;  %v2480_v50 = vld [vmem:[%s2586_s29 + $0x30] ss:$0 sps:$4 sm:$0x33]  }
  0x19   : > { %2146 = vmatmul.mubr.msk.bf16.vlgmr.msra.gmra.mrb[0].mxu0 %vm401_vm2, %v1022_v24  ;;  %v362_v25 = vrot.slane %v360_v21, 1  ;;  %v1180_v46 = vrot.slane %v2652_v44, 2  ;;  %v1026_v48 = vsel %vm1019_vm3, %v1023_v28, %v1025_v39  ;;  %v383_v52 = vrot.slane %v381_v42, 1  ;;  %v2686_v2 = vld [vmem:[%s2586_s29 + $0x2c] ss:$0 sps:$4 sm:$0x33]  }
  0x1a   : > { %2166 = vmatpush3.bf16.msra.mxu0 %v1200_v17  ;;  %2149 = vmatprep.mubr.msk.bf16.mxu0 %vm2515_vm1, %v2514_v1  ;;  %v376_v40 = vsel %vm356_vm4, %v371_v36, %v375_v37  ;;  %v379_v51 = vor.u32 %v377_v41, %v375_v37  ;;  %v1902_v55 = vcombine.low %v580_v47, %v315_v13  ;;  %v1182_v56 = vrot.slane %v2480_v50, 2  ;;  %v2697_v5 = vld [vmem:[%s2586_s29 + $0x28] ss:$0 sps:$4 sm:$0x11]   ;;  %v1446_v7 = vld [vmem:[%s2586_s29 + $0x8] sm:$0x8] }
  0x1b   : > { %v363_v29 = vor.u32 %v362_v25, %v358_v20  ;;  %2187 = vmatprep.subr.bf16.mxu0 %v2514_v1  ;;  %v2671_v54 = vsel %vm1019_vm3, %v1178_v45, %v1180_v46  ;;  %v1027_v59 = vrot.slane %v2660_v49, 2  ;;  %v590_v61 = vrot.slane %v2615_v23, 1  ;;  %v2706_v13 = vld [vmem:[%s2586_s29 + $0x10] sm:$0xff]   ;;  %v1133_v14 = vld [vmem:[%s2586_s29 + $0xc] sm:$0xf]  ;;  %v2718_v25 = vld [vmem:[%s2586_s29 + $0x18] sm:$0xff]  }
  0x1c   : > { %v587_v58 = vrot.slane %v1902_v55, 1  ;;  %v2679_v60 = vsel %vm1019_vm3, %v1180_v46, %v1182_v56  ;;  %v384_v62 = vsel %vm356_vm4, %v379_v51, %v383_v52  ;;  %v385_v63 = vshrl.u32 %v2638_v38, 16  ;;  %v1132_v20 = vld [vmem:[%s2586_s29 + $0x8] sm:$0xc] }
  0x1d   : > { %v368_v33 = vsel %vm356_vm4, %v363_v29, %v367_v26  ;;  %v389_v0 = vshll.u32 %v2666_v53, 16  ;;  %v2694_v4 = vsel %vm586_vm5, %v588_v57, %v590_v61  ;;  %v1028_v6 = vsel %vm1019_vm3, %v1025_v39, %v1027_v59  ;;  %v2734_v41 = vld [vmem:[%s2586_s29 + $0x30] ss:$0 sps:$4 sm:$0x77]  }
  0x1e   : > { %2036 = vmatmul.mubr.msk.bf16.vlgmr.msra.gmra.mrb[0].mxu1 %vm401_vm2, %v368_v33  ;;  %v2689_v3 = vsel %vm586_vm5, %v587_v58, %v588_v57  ;;  %v387_v10 = vor.u32 %v385_v63, %v383_v52  ;;  %v1029_v12 = vrot.slane %v2686_v2, 2  ;;  %v393_v17 = vshrl.u32 %v2666_v53, 16 }
  0x1f   : > { %2056 = vmatpush3.bf16.msra.mxu1 %v505_v32  ;;  %2039 = vmatprep.mubr.msk.bf16.mxu1 %vm2515_vm1, %v2514_v1  ;;  %v391_v11 = vrot.slane %v389_v0, 1  ;;  %v397_v18 = vshll.u32 %v2697_v5, 16  ;;  %v1954_v21 = vcombine.low %v1446_v7, %v1133_v14  ;;  %v1454_v22 = vrot.slane %v2706_v13, 3  ;;  %v2484_v32 = vld [vmem:[%s2586_s29 + $0x2c] ss:$0 sps:$4 sm:$0x11]  }
  0x20   : > { %2077 = vmatprep.subr.bf16.mxu1 %v2514_v1  ;;  %v860_v24 = vshrl.u32 %v2593_v8, 16  ;;  %v740_v26 = vrot.slane %v2593_v8, 1  ;;  %v741_v27 = vrot.slane %v2596_v9, 1  ;;  %v863_v28 = vshll.u32 %v2593_v8, 16  ;;  %v1946_v7 = vld [vmem:[%s3055_s1 + $0x1c] sm:$0xf] }
  0x21   : > { %2150 = vmatmul.mubr.msk.bf16.gmra.mrb[4].mxu0 %vm401_vm2, %v1024_v34  ;;  %v392_v29 = vsel %vm356_vm4, %v387_v10, %v391_v11  ;;  %v1030_v30 = vsel %vm1019_vm3, %v1027_v59, %v1029_v12  ;;  %v1453_v31 = vrot.slane %v1954_v21, 3  ;;  %v2726_v33 = vcombine.low %v1132_v20, %v1133_v14 }
  0x22   : > { %2153 = vmatprep.mubr.msk.bf16.mxu0 %vm2515_vm1, %v2514_v1  ;;  %v2729_v34 = vsel %vm586_vm5, %v740_v26, %v741_v27  ;;  %v1456_v36 = vrot.slane %v2718_v25, 3  ;;  %v743_v37 = vrot.slane %v2609_v19, 1  ;;  %v395_v39 = vor.u32 %v393_v17, %v391_v11 }
  0x23   : > { %v2737_v8 = vsel %vm1452_vm6, %v1453_v31, %v1454_v22  ;;  %v1458_v42 = vrot.slane %v2649_v43, 3  ;;  %v1460_v50 = vrot.slane %v2652_v44, 3  ;;  %v747_v52 = vrot.slane %v2660_v49, 1 }
  0x24   : > { %v2743_v46 = vsel %vm1452_vm6, %v1454_v22, %v1456_v36  ;;  %v2746_v47 = vsel %vm586_vm5, %v741_v27, %v743_v37  ;;  %v1462_v55 = vrot.slane %v2734_v41, 3  ;;  %v749_v56 = vrot.slane %v2484_v32, 1 }
  0x25   : > { %v2753_v51 = vsel %vm1452_vm6, %v1456_v36, %v1458_v42  ;;  %v1174_v57 = vrot.slane %v2706_v13, 2  ;;  %v2767_v59 = vsel %vm1452_vm6, %v1458_v42, %v1460_v50  ;;  %v862_v10 = vrot.slane %v860_v24, 1 }
  0x26   : > { %2040 = vmatmul.mubr.msk.bf16.gmra.mrb[4].mxu1 %vm401_vm2, %v376_v40  ;;  %v399_v40 = vrot.slane %v397_v18, 1  ;;  %v2775_v0 = vsel %vm1452_vm6, %v1460_v50, %v1462_v55  ;;  %v865_v11 = vrot.slane %v863_v28, 2  ;;  %v868_v12 = vshrl.u32 %v2596_v9, 16 }
  0x27   : > { %2043 = vmatprep.mubr.msk.bf16.mxu1 %vm2515_vm1, %v2514_v1  ;;  %v871_v14 = vshll.u32 %v2596_v9, 16  ;;  %v1361_v24 = vsel %vm417_vm0, %v1946_v7, 0  ;;  %v877_v27 = vshrl.u32 %v2609_v19, 16  ;;  %v880_v9 = vshll.u32 %v2609_v19, 16 }
  0x28   : > { %v400_v17 = vsel %vm356_vm4, %v395_v39, %v399_v40  ;;  %v866_v18 = vor.u32 %v865_v11, %v862_v10  ;;  %v870_v20 = vrot.slane %v868_v12, 1  ;;  %v1176_v32 = vrot.slane %v2718_v25, 2 }
  0x29   : > { %2154 = vmatmul.mubr.msk.bf16.gmra.mrb[8].mxu0 %vm401_vm2, %v1026_v48  ;;  %v745_v48 = vrot.slane %v2633_v35, 1  ;;  %v873_v21 = vrot.slane %v871_v14, 2  ;;  %v882_v31 = vrot.slane %v880_v9, 2  ;;  %v886_v40 = vshrl.u32 %v2633_v35, 16  ;;  %v1953_v9 = vld [vmem:[%s3055_s1 + $0x20] sm:$0xf] }
  0x2a   : > { %2157 = vmatprep.mubr.msk.bf16.mxu0 %vm2515_vm1, %v2514_v1  ;;  %v1177_v39 = vsel %vm1019_vm3, %v1174_v57, %v1176_v32  ;;  %v889_v42 = vshll.u32 %v2633_v35, 16  ;;  %v1179_v35 = vsel %vm1019_vm3, %v1176_v32, %v1178_v45  ;;  %v895_v55 = vshrl.u32 %v2660_v49, 16 }
  0x2b   : > { %v2764_v58 = vsel %vm586_vm5, %v743_v37, %v745_v48  ;;  %v2772_v63 = vsel %vm586_vm5, %v745_v48, %v747_v52  ;;  %v874_v26 = vor.u32 %v873_v21, %v870_v20  ;;  %v888_v48 = vrot.slane %v886_v40, 1 }
  0x2c   : > { %v891_v50 = vrot.slane %v889_v42, 2  ;;  %v904_v45 = vshrl.u32 %v2686_v2, 16  ;;  %v1293_v12 = vshrl.u32 %v2726_v33, 16  ;;  %v1296_v14 = vshll.u32 %v2726_v33, 16 }
  0x2d   : > { %v2796_v28 = vsel %vm858_vm7, %v866_v18, %v874_v26  ;;  %v1304_v18 = vshll.u32 %v2706_v13, 16 }
  0x2e   : > { %2044 = vmatmul.mubr.msk.bf16.gmra.mrb[8].mxu1 %vm401_vm2, %v384_v62  ;;  %v1173_v62 = vrot.slane %v2726_v33, 2  ;;  %v906_v10 = vrot.slane %v904_v45, 1 }
  0x2f   : > { %2047 = vmatprep.mubr.msk.bf16.mxu1 %vm2515_vm1, %v2514_v1 }
  0x30   : > { %v1175_v22 = vsel %vm1019_vm3, %v1173_v62, %v1174_v57  ;;  %v897_v57 = vrot.slane %v895_v55, 1 }
  0x31   : > { %2158 = vmatmul.mubr.msk.bf16.gmra.mrb[12].mxu0 %vm401_vm2, %v1028_v6  ;;  %v2778_v6 = vsel %vm586_vm5, %v747_v52, %v749_v56  ;;  %v898_v56 = vshll.u32 %v2660_v49, 16  ;;  %v907_v49 = vshll.u32 %v2686_v2, 16  ;;  %v1298_v2 = vrot.slane %v1296_v14, 3 }
  0x32   : > { %2161 = vmatprep.mubr.msk.bf16.mxu0 %vm2515_vm1, %v2514_v1 }
  0x33   : > { %v900_v62 = vrot.slane %v898_v56, 2  ;;  %v909_v11 = vrot.slane %v907_v49, 2  ;;  %v592_v56 = vrot.slane %v2638_v38, 1  ;;  %v594_v49 = vrot.slane %v2666_v53, 1 }
  0x35   : > { %v901_v7 = vor.u32 %v900_v62, %v897_v57  ;;  %v910_v20 = vor.u32 %v909_v11, %v906_v10  ;;  %v1340_v62 = vshll.u32 %v2734_v41, 16  ;;  %v596_v10 = vrot.slane %v2697_v5, 1  ;;  %v1592_v11 = vld [vmem:[%s3058_s4] sm:$0x3]  ;;  %v1920_v5 = vld [vmem:[%s3055_s1 + $0x10] sm:$0xf] }
  0x36   : > { %2048 = vmatmul.mubr.msk.bf16.gmra.mrb[12].mxu1 %vm401_vm2, %v392_v29  ;;  %v1901_v29 = vld [vmem:[%s3055_s1 + $0x8] sm:$0xf]  ;;  %v928_v14 = vsel %vm417_vm0, %v1920_v5, 0 }
  0x37   : > { %2051 = vmatprep.mubr.msk.bf16.mxu1 %vm2515_vm1, %v2514_v1  ;;  %v614_v36 = vsel %vm417_vm0, %v1901_v29, 0  ;;  %v2854_v21 = vsel %vm858_vm7, %v901_v7, %v910_v20 }
  0x39   : > { %2162 = vmatmul.mubr.msk.bf16.gmra.mrb[16].mxu0 %vm401_vm2, %v1030_v30  ;;  %v879_v30 = vrot.slane %v877_v27, 1  ;;  %v1313_v27 = vshll.u32 %v2718_v25, 16 }
  0x3a   : > { %2167 = vmatprep.mubr.msk.bf16.mxu0 %vm2515_vm1, %v2514_v1 }
  0x3b   : > { %v883_v19 = vor.u32 %v882_v31, %v879_v30  ;;  %v1315_v30 = vrot.slane %v1313_v27, 3  ;;  %v1480_v31 = vsel %vm417_vm0, %v1953_v9, 0 }
  0x3d   : > { %v2808_v37 = vsel %vm858_vm7, %v874_v26, %v883_v19  ;;  %v1306_v26 = vrot.slane %v1304_v18, 3 }
  0x3e   : > { %2052 = vmatmul.mubr.msk.bf16.gmra.mrb[16].mxu1 %vm401_vm2, %v400_v17  ;;  %v1301_v17 = vshrl.u32 %v2706_v13, 16 }
  0x3f   : > { %2057 = vmatprep.mubr.msk.bf16.mxu1 %vm2515_vm1, %v2514_v1 }
  0x41   : > { %2168 = vmatmul.mubr.msk.bf16.vlgmr.msra.gmra.mrb[0].mxu0 %vm401_vm2, %v1175_v22  ;;  %v1303_v22 = vrot.slane %v1301_v17, 2 }
  0x42   : > { %2188 = vmatpush3.bf16.msra.mxu0 %v1361_v24  ;;  %2171 = vmatprep.mubr.msk.bf16.mxu0 %vm2515_vm1, %v2514_v1  ;;  %v1310_v24 = vshrl.u32 %v2718_v25, 16  ;;  %v1908_v25 = vld [vmem:[%s3055_s1 + $0xc] sm:$0xf] }
  0x43   : > { %2209 = vmatprep.subr.bf16.mxu0 %v2514_v1  ;;  %v1307_v33 = vor.u32 %v1306_v26, %v1303_v22 }
  0x46   : > { %2058 = vmatmul.mubr.msk.bf16.vlgmr.msra.gmra.mrb[0].mxu1 %vm401_vm2, %v2602_v15  ;;  %v892_v15 = vor.u32 %v891_v50, %v888_v48  ;;  %v1328_v50 = vshrl.u32 %v2652_v44, 16 }
  0x47   : > { %2078 = vmatpush3.bf16.msra.mxu1 %v614_v36  ;;  %2061 = vmatprep.mubr.msk.bf16.mxu1 %vm2515_vm1, %v2514_v1  ;;  %v1322_v36 = vshll.u32 %v2649_v43, 16 }
  0x48   : > { %2099 = vmatprep.subr.bf16.mxu1 %v2514_v1  ;;  %v2822_v52 = vsel %vm858_vm7, %v883_v19, %v892_v15  ;;  %v1319_v19 = vshrl.u32 %v2649_v43, 16 }
  0x49   : > { %2172 = vmatmul.mubr.msk.bf16.gmra.mrb[4].mxu0 %vm401_vm2, %v1177_v39  ;;  %v767_v39 = vsel %vm417_vm0, %v1908_v25, 0  ;;  %v1324_v48 = vrot.slane %v1322_v36, 3 }
  0x4a   : > { %2175 = vmatprep.mubr.msk.bf16.mxu0 %vm2515_vm1, %v2514_v1  ;;  %v1321_v42 = vrot.slane %v1319_v19, 2 }
  0x4c   : > { %v1325_v43 = vor.u32 %v1324_v48, %v1321_v42 }
  0x4e   : > { %2062 = vmatmul.mubr.msk.bf16.gmra.mrb[4].mxu1 %vm401_vm2, %v2605_v16  ;;  %v2837_v16 = vsel %vm858_vm7, %v892_v15, %v901_v7 }
  0x4f   : > { %2065 = vmatprep.mubr.msk.bf16.mxu1 %vm2515_vm1, %v2514_v1 }
  0x51   : > { %2176 = vmatmul.mubr.msk.bf16.gmra.mrb[8].mxu0 %vm401_vm2, %v1179_v35  ;;  %v1330_v35 = vrot.slane %v1328_v50, 2 }
  0x52   : > { %2179 = vmatprep.mubr.msk.bf16.mxu0 %vm2515_vm1, %v2514_v1 }
  0x56   : > { %2066 = vmatmul.mubr.msk.bf16.gmra.mrb[8].mxu1 %vm401_vm2, %v2615_v23  ;;  %v595_v23 = vsel %vm586_vm5, %v592_v56, %v594_v49 }
  0x57   : > { %2069 = vmatprep.mubr.msk.bf16.mxu1 %vm2515_vm1, %v2514_v1 }
  0x59   : > { %2180 = vmatmul.mubr.msk.bf16.gmra.mrb[12].mxu0 %vm401_vm2, %v2671_v54  ;;  %v1295_v54 = vrot.slane %v1293_v12, 2  ;;  %v1636_v12 = vsel %vm1634_vm9, %v1592_v11, 0 }
  0x5a   : > { %2183 = vmatprep.mubr.msk.bf16.mxu0 %vm2515_vm1, %v2514_v1 }
  0x5b   : > { %v1299_v13 = vor.u32 %v1298_v2, %v1295_v54 }
  0x5d   : > { %v1308_v29 = vsel %vm1291_vm8, %v1299_v13, %v1307_v33 }
  0x5e   : > { %2070 = vmatmul.mubr.msk.bf16.gmra.mrb[12].mxu1 %vm401_vm2, %v2638_v38  ;;  %v1342_v38 = vrot.slane %v1340_v62, 3 }
  0x5f   : > { %2073 = vmatprep.mubr.msk.bf16.mxu1 %vm2515_vm1, %v2514_v1 }
  0x61   : > { %2184 = vmatmul.mubr.msk.bf16.gmra.mrb[16].mxu0 %vm401_vm2, %v2679_v60  ;;  %v1312_v60 = vrot.slane %v1310_v24, 2 }
  0x62   : > { %2189 = vmatprep.mubr.msk.bf16.mxu0 %vm2515_vm1, %v2514_v1 }
  0x63   : > { %v1316_v32 = vor.u32 %v1315_v30, %v1312_v60 }
  0x65   : > { %v1317_v40 = vsel %vm1291_vm8, %v1307_v33, %v1316_v32  ;;  %v1326_v15 = vsel %vm1291_vm8, %v1316_v32, %v1325_v43 }
  0x66   : > { %2074 = vmatmul.mubr.msk.bf16.gmra.mrb[16].mxu1 %vm401_vm2, %v2666_v53  ;;  %v597_v53 = vsel %vm586_vm5, %v594_v49, %v596_v10 }
  0x67   : > { %2079 = vmatprep.mubr.msk.bf16.mxu1 %vm2515_vm1, %v2514_v1 }
  0x69   : > { %2190 = vmatmul.mubr.msk.bf16.vlgmr.msra.gmra.mrb[0].mxu0 %vm401_vm2, %v1308_v29 }
  0x6a   : > { %2210 = vmatpush3.bf16.msra.mxu0 %v1480_v31  ;;  %2193 = vmatprep.mubr.msk.bf16.mxu0 %vm2515_vm1, %v2514_v1 }
  0x6b   : > { %2231 = vmatprep.subr.bf16.mxu0 %v2514_v1 }
  0x6e   : > { %2080 = vmatmul.mubr.msk.bf16.vlgmr.msra.gmra.mrb[0].mxu1 %vm401_vm2, %v2689_v3  ;;  %v1331_v3 = vshll.u32 %v2652_v44, 16  ;;  %v1337_v44 = vshrl.u32 %v2734_v41, 16 }
  0x6f   : > { %2100 = vmatpush3.bf16.msra.mxu1 %v767_v39  ;;  %2083 = vmatprep.mubr.msk.bf16.mxu1 %vm2515_vm1, %v2514_v1 }
  0x70   : > { %2121 = vmatprep.subr.bf16.mxu1 %v2514_v1  ;;  %v1333_v55 = vrot.slane %v1331_v3, 3  ;;  %v1339_v45 = vrot.slane %v1337_v44, 2 }
  0x71   : > { %2194 = vmatmul.mubr.msk.bf16.gmra.mrb[4].mxu0 %vm401_vm2, %v1317_v40 }
  0x72   : > { %2197 = vmatprep.mubr.msk.bf16.mxu0 %vm2515_vm1, %v2514_v1  ;;  %v1334_v57 = vor.u32 %v1333_v55, %v1330_v35  ;;  %v1343_v41 = vor.u32 %v1342_v38, %v1339_v45 }
  0x74   : > { %v1335_v7 = vsel %vm1291_vm8, %v1325_v43, %v1334_v57 }
  0x76   : > { %2084 = vmatmul.mubr.msk.bf16.gmra.mrb[4].mxu1 %vm401_vm2, %v2694_v4  ;;  %v593_v4 = vsel %vm586_vm5, %v590_v61, %v592_v56  ;;  %v1344_v61 = vsel %vm1291_vm8, %v1334_v57, %v1343_v41 }
  0x77   : > { %2087 = vmatprep.mubr.msk.bf16.mxu1 %vm2515_vm1, %v2514_v1 }
  0x79   : > { %2198 = vmatmul.mubr.msk.bf16.gmra.mrb[8].mxu0 %vm401_vm2, %v1326_v15 }
  0x7a   : > { %2201 = vmatprep.mubr.msk.bf16.mxu0 %vm2515_vm1, %v2514_v1 }
  0x7e   : > { %2088 = vmatmul.mubr.msk.bf16.gmra.mrb[8].mxu1 %vm401_vm2, %v593_v4 }
  0x7f   : > { %2091 = vmatprep.mubr.msk.bf16.mxu1 %vm2515_vm1, %v2514_v1 }
  0x81   : > { %2202 = vmatmul.mubr.msk.bf16.gmra.mrb[12].mxu0 %vm401_vm2, %v1335_v7 }
  0x82   : > { %2205 = vmatprep.mubr.msk.bf16.mxu0 %vm2515_vm1, %v2514_v1 }
  0x86   : > { %2092 = vmatmul.mubr.msk.bf16.gmra.mrb[12].mxu1 %vm401_vm2, %v595_v23 }
  0x87   : > { %2095 = vmatprep.mubr.msk.bf16.mxu1 %vm2515_vm1, %v2514_v1 }
  0x89   : > { %2206 = vmatmul.mubr.msk.bf16.gmra.mrb[16].mxu0 %vm401_vm2, %v1344_v61 }
  0x8a   : > { %2211 = vmatprep.mubr.msk.bf16.mxu0 %vm2515_vm1, %v2514_v1 }
  0x8e   : > { %2096 = vmatmul.mubr.msk.bf16.gmra.mrb[16].mxu1 %vm401_vm2, %v597_v53 }
  0x8f   : > { %2101 = vmatprep.mubr.msk.bf16.mxu1 %vm2515_vm1, %v2514_v1 }
  0x91   : > { %2212 = vmatmul.mubr.msk.bf16.vlgmr.msra.gmra.mrb[0].mxu0 %vm401_vm2, %v2737_v8  ;;  %v2486_v8 = vld [vmem:[%s2760_s12 + $0x8] sm:$0xff]  }
  0x92   : > { %2232 = vmatpush3.bf16.msra.mxu0 %v1636_v12  ;;  %2215 = vmatprep.mubr.msk.bf16.mxu0 %vm2515_vm1, %v2514_v1 }
  0x96   : > { %2102 = vmatmul.mubr.msk.bf16.vlgmr.msra.gmra.mrb[0].mxu1 %vm401_vm2, %v2729_v34  ;;  %v2485_v34 = vld [vmem:[%s2760_s12] sm:$0xff]  }
  0x97   : > { %2122 = vmatpush3.bf16.msra.mxu1 %v928_v14  ;;  %2105 = vmatprep.mubr.msk.bf16.mxu1 %vm2515_vm1, %v2514_v1 }
  0x99   : > { %2216 = vmatmul.mubr.msk.bf16.gmra.mrb[4].mxu0 %vm401_vm2, %v2743_v46  ;;  %v2487_v46 = vld [vmem:[%s2760_s12 + $0x10] sm:$0xff]  }
  0x9a   : > { %2219 = vmatprep.mubr.msk.bf16.mxu0 %vm2515_vm1, %v2514_v1 }
  0x9e   : > { %2106 = vmatmul.mubr.msk.bf16.gmra.mrb[4].mxu1 %vm401_vm2, %v2746_v47  ;;  %v2488_v47 = vld [vmem:[%s2760_s12 + $0x18] sm:$0xff]  }
  0x9f   : > { %2109 = vmatprep.mubr.msk.bf16.mxu1 %vm2515_vm1, %v2514_v1 }
  0xa1   : > { %2220 = vmatmul.mubr.msk.bf16.gmra.mrb[8].mxu0 %vm401_vm2, %v2753_v51  ;;  %v2489_v51 = vld [vmem:[%s2760_s12 + $0x20] sm:$0xff]  }
  0xa2   : > { %2223 = vmatprep.mubr.msk.bf16.mxu0 %vm2515_vm1, %v2514_v1 }
  0xa6   : > { %2110 = vmatmul.mubr.msk.bf16.gmra.mrb[8].mxu1 %vm401_vm2, %v2764_v58 }
  0xa7   : > { %2113 = vmatprep.mubr.msk.bf16.mxu1 %vm2515_vm1, %v2514_v1 }
  0xa9   : > { %2224 = vmatmul.mubr.msk.bf16.gmra.mrb[12].mxu0 %vm401_vm2, %v2767_v59 }
  0xaa   : > { %2227 = vmatprep.mubr.msk.bf16.mxu0 %vm2515_vm1, %v2514_v1 }
  0xae   : > { %2114 = vmatmul.mubr.msk.bf16.gmra.mrb[12].mxu1 %vm401_vm2, %v2772_v63 }
  0xaf   : > { %2117 = vmatprep.mubr.msk.bf16.mxu1 %vm2515_vm1, %v2514_v1 }
  0xb1   : > { %2228 = vmatmul.mubr.msk.bf16.gmra.mrb[16].mxu0 %vm401_vm2, %v2775_v0 }
  0xb2   : > { %2233 = vmatprep.mubr.msk.bf16.mxu0 %vm2515_vm1, %v2514_v1 }
  0xb6   : > { %2118 = vmatmul.mubr.msk.bf16.gmra.mrb[16].mxu1 %vm401_vm2, %v2778_v6  ;;  %v3017_v6 = vld [vmem:[%s3056_s2] ss:$0 sm:$0xff] }
  0xb7   : > { %2123 = vmatprep.mubr.msk.bf16.mxu1 %vm2515_vm1, %v2514_v1 }
  0xb9   : > { %2234 = vmatmul.mubr.msk.bf16.vlgmr.msra.gmra.mrb[0].mxu0 %vm1618_vm10, %v2485_v34 }
  0xba   : > { %2237 = vmatprep.mubr.msk.bf16.mxu0 %vm2515_vm1, %v2514_v1 }
  0xbe   : > { %2124 = vmatmul.mubr.msk.bf16.vlgmr.msra.gmra.mrb[0].mxu1 %vm401_vm2, %v2796_v28 }
  0xbf   : > { %2127 = vmatprep.mubr.msk.bf16.mxu1 %vm2515_vm1, %v2514_v1 }
  0xc1   : > { %2238 = vmatmul.mubr.msk.bf16.gmra.mrb[4].mxu0 %vm1618_vm10, %v2486_v8 }
  0xc2   : > { %2241 = vmatprep.mubr.msk.bf16.mxu0 %vm2515_vm1, %v2514_v1 }
  0xc6   : > { %2128 = vmatmul.mubr.msk.bf16.gmra.mrb[4].mxu1 %vm401_vm2, %v2808_v37 }
  0xc7   : > { %2131 = vmatprep.mubr.msk.bf16.mxu1 %vm2515_vm1, %v2514_v1 }
  0xc9   : > { %2242 = vmatmul.mubr.msk.bf16.gmra.mrb[8].mxu0 %vm1618_vm10, %v2487_v46 }
  0xca   : > { %2245 = vmatprep.mubr.msk.bf16.mxu0 %vm2515_vm1, %v2514_v1 }
  0xce   : > { %2132 = vmatmul.mubr.msk.bf16.gmra.mrb[8].mxu1 %vm401_vm2, %v2822_v52 }
  0xcf   : > { %2135 = vmatprep.mubr.msk.bf16.mxu1 %vm2515_vm1, %v2514_v1 }
  0xd1   : > { %2246 = vmatmul.mubr.msk.bf16.gmra.mrb[12].mxu0 %vm1618_vm10, %v2488_v47 }
  0xd2   : > { %2249 = vmatprep.mubr.msk.bf16.mxu0 %vm2515_vm1, %v2514_v1 }
  0xd6   : > { %2136 = vmatmul.mubr.msk.bf16.gmra.mrb[12].mxu1 %vm401_vm2, %v2837_v16 }
  0xd7   : > { %2139 = vmatprep.mubr.msk.bf16.mxu1 %vm2515_vm1, %v2514_v1 }
  0xd9   : > { %2250 = vmatmul.mubr.msk.bf16.gmra.mrb[16].mxu0 %vm1618_vm10, %v2489_v51 }
  0xde   : > { %2140 = vmatmul.mubr.msk.bf16.gmra.mrb[16].mxu1 %vm401_vm2, %v2854_v21 }
 0x18c   : > { %v1672_v58 = vpop.f32.mrb[0].mxu0 }
 0x18d   : > { %v2235_v59 = vpop.f32.mrb[1].mxu0 }
 0x18e   : > { %v1675_v63 = vpop.f32.mrb[2].mxu0 }
 0x18f   : > { %v2236_v0 = vpop.f32.mrb[3].mxu0 }
 0x191   : > { %v964_v28 = vpop.f32.mrb[0].mxu1 }
 0x192   : > { %v2253_v37 = vadd.f32 %v3017_v6, %v964_v28  ;;  %v2125_v52 = vpop.f32.mrb[1].mxu1 }
 0x193   : > { %v967_v1 = vpop.f32.mrb[2].mxu1 }
 0x194   : > { %v2254_v16 = vadd.f32 %v2253_v37, %v1672_v58  ;;  %v2255_v17 = vadd.f32 %v3017_v6, %v967_v1  ;;  %v2126_v18 = vpop.f32.mrb[3].mxu1  ;;  %v1680_v20 = vpop.f32.mrb[4].mxu0 }
 0x195   : > { %v2239_v21 = vpop.f32.mrb[5].mxu0 }
 0x196   : > { %v1721_v54 = vmax.f32 %v2254_v16, 0.0  ;;  %v2256_v2 = vadd.f32 %v2255_v17, %v1675_v63  ;;  %v1683_v22 = vpop.f32.mrb[6].mxu0 }
 0x197   : > { %v2240_v26 = vpop.f32.mrb[7].mxu0 }
 0x198   : > { %1731 = vst [vmem:[%s3025_s9] sm:$0xff] %v1721_v54  ;;  %v1722_v13 = vmax.f32 %v2256_v2, 0.0 }
 0x199   : > { %v972_v33 = vpop.f32.mrb[4].mxu1 }
 0x19a   : > { %1732 = vst [vmem:[%s3025_s9 + $0x8] sm:$0xff] %v1722_v13  ;;  %v2257_v24 = vadd.f32 %v3017_v6, %v972_v33  ;;  %v2129_v27 = vpop.f32.mrb[5].mxu1 }
 0x19b   : > { %v975_v9 = vpop.f32.mrb[6].mxu1 }
 0x19c   : > { %v2258_v29 = vadd.f32 %v2257_v24, %v1680_v20  ;;  %v2259_v60 = vadd.f32 %v3017_v6, %v975_v9  ;;  %v2130_v30 = vpop.f32.mrb[7].mxu1  ;;  %v1688_v31 = vpop.f32.mrb[8].mxu0 }
 0x19d   : > { %v2243_v25 = vpop.f32.mrb[9].mxu0 }
 0x19e   : > { %v1723_v32 = vmax.f32 %v2258_v29, 0.0  ;;  %v2260_v19 = vadd.f32 %v2259_v60, %v1683_v22  ;;  %v1691_v36 = vpop.f32.mrb[10].mxu0 }
 0x19f   : > { %v2244_v39 = vpop.f32.mrb[11].mxu0 }
 0x1a0   : > { %1733 = vst [vmem:[%s3025_s9 + $0x10] sm:$0xff] %v1723_v32  ;;  %v1724_v40 = vmax.f32 %v2260_v19, 0.0 }
 0x1a1   : > { %v980_v42 = vpop.f32.mrb[8].mxu1 }
 0x1a2   : > { %1734 = vst [vmem:[%s3025_s9 + $0x18] sm:$0xff] %v1724_v40  ;;  %v2261_v48 = vadd.f32 %v3017_v6, %v980_v42  ;;  %v2133_v43 = vpop.f32.mrb[9].mxu1 }
 0x1a3   : > { %v983_v50 = vpop.f32.mrb[10].mxu1 }
 0x1a4   : > { %v2262_v3 = vadd.f32 %v2261_v48, %v1688_v31  ;;  %v2263_v15 = vadd.f32 %v3017_v6, %v983_v50  ;;  %v2134_v35 = vpop.f32.mrb[11].mxu1  ;;  %v1696_v55 = vpop.f32.mrb[12].mxu0 }
 0x1a5   : > { %v2247_v56 = vpop.f32.mrb[13].mxu0 }
 0x1a6   : > { %v1725_v57 = vmax.f32 %v2262_v3, 0.0  ;;  %v2264_v44 = vadd.f32 %v2263_v15, %v1691_v36  ;;  %v1699_v62 = vpop.f32.mrb[14].mxu0 }
 0x1a7   : > { %v2248_v4 = vpop.f32.mrb[15].mxu0 }
 0x1a8   : > { %1735 = vst [vmem:[%s3025_s9 + $0x20] sm:$0xff] %v1725_v57  ;;  %v1726_v7 = vmax.f32 %v2264_v44, 0.0 }
 0x1a9   : > { %v988_v45 = vpop.f32.mrb[12].mxu1 }
 0x1aa   : > { %1736 = vst [vmem:[%s3025_s9 + $0x28] sm:$0xff] %v1726_v7  ;;  %v2265_v38 = vadd.f32 %v3017_v6, %v988_v45  ;;  %v2137_v49 = vpop.f32.mrb[13].mxu1 }
 0x1ab   : > { %v991_v41 = vpop.f32.mrb[14].mxu1 }
 0x1ac   : > { %v2266_v23 = vadd.f32 %v2265_v38, %v1696_v55  ;;  %v2267_v61 = vadd.f32 %v3017_v6, %v991_v41  ;;  %v2138_v10 = vpop.f32.mrb[15].mxu1  ;;  %v1704_v53 = vpop.f32.mrb[16].mxu0 }
 0x1ad   : > { %v2251_v11 = vpop.f32.mrb[17].mxu0 }
 0x1ae   : > { %v1727_v12 = vmax.f32 %v2266_v23, 0.0  ;;  %v2268_v5 = vadd.f32 %v2267_v61, %v1699_v62  ;;  %v1707_v14 = vpop.f32.mrb[18].mxu0 }
 0x1af   : > { %v2252_v34 = vpop.f32.mrb[19].mxu0 }
 0x1b0   : > { %1737 = vst [vmem:[%s3025_s9 + $0x30] sm:$0xff] %v1727_v12  ;;  %v1728_v8 = vmax.f32 %v2268_v5, 0.0 }
 0x1b1   : > { %v996_v46 = vpop.f32.mrb[16].mxu1 }
 0x1b2   : > { %1738 = vst [vmem:[%s3025_s9 + $0x38] sm:$0xff] %v1728_v8  ;;  %v2269_v47 = vadd.f32 %v3017_v6, %v996_v46  ;;  %v2141_v51 = vpop.f32.mrb[17].mxu1 }
 0x1b3   : > { %v999_v58 = vpop.f32.mrb[18].mxu1 }
 0x1b4   : > { %v2270_v59 = vadd.f32 %v2269_v47, %v1704_v53  ;;  %v2271_v63 = vadd.f32 %v3017_v6, %v999_v58  ;;  %v2142_v0 = vpop.f32.mrb[19].mxu1 }
 0x1b6   : > { %v1729_v28 = vmax.f32 %v2270_v59, 0.0  ;;  %v2272_v37 = vadd.f32 %v2271_v63, %v1707_v14 }
 0x1b8   : > { %1739 = vst [vmem:[%s3025_s9 + $0x40] sm:$0xff] %v1729_v28  ;;  %v1730_v52 = vmax.f32 %v2272_v37, 0.0 }
 0x1ba   : > { %1740 = vst [vmem:[%s3025_s9 + $0x48] sm:$0xff] %v1730_v52 }
 0x1bb PF: > { %s15_s20 = sadd.s32 1, %s2512_s20   ;;  %s3060_s18 = smov %s2508_s19 }
 0x1bc   : > { %p12_p5 = scmp.ge.s32.totalorder %s15_s20, 4   ;;  %s3061_s19 = smov %s3063_s21 }
 0x1be   :  { %14 = sbr.rel (!%p12_p5) target bundleno = 2 (0x2), region = 90 }

</bundles_post_ra>
